<compile_context>
chip_gen: v7x
topology: tpu7x:2x2x1
jax: 0.10.0
libtpu: 0.0.40
codegen_flags: <defaults>
</compile_context>

<pallas_src>
import jax
import jax.numpy as jnp
from jax.experimental import pallas as pl
from jax.experimental.pallas import tpu as pltpu


_LANE = 128
_SUBLANE = 8
_TM_MAX = 2048            # rows per block in dense path  -> 2048*128*4B = 1 MiB / block
_TN_MAX = 64 * 1024       # lanes per block in ragged path (worst-case 2 MiB padded)
_VMEM_LIMIT_BYTES = 32 * 1024 * 1024
_MIN_STEPS = 2            # >=2 grid steps so v7x's two TensorCores both get work


def _round_up(x, m):
    return ((x + m - 1) // m) * m


def _background_kernel(rgb_ref, w_ref, bg_ref, out_ref):
    # Pure elementwise: out = rgb + (1 - w) * bg.  Compute in f32, cast back,
    # so bf16/fp16 I/O is supported on all generations (incl. v5e).
    rgb = rgb_ref[...].astype(jnp.float32)
    w = w_ref[...].astype(jnp.float32)
    bg = bg_ref[...].astype(jnp.float32)
    out_ref[...] = (rgb + (1.0 - w) * bg).astype(out_ref.dtype)


def _choose_rows(num_rows):
    """Row-tile for the dense (rows, 128) path: multiple of 8 (or full extent)."""
    if num_rows > _TM_MAX:
        return _TM_MAX
    if num_rows >= 2 * _SUBLANE and _MIN_STEPS > 1:
        return min(_round_up(pl.cdiv(num_rows, _MIN_STEPS), _SUBLANE), num_rows)
    return num_rows                       # full extent (allowed even if not %8)


def _choose_lanes(total):
    """Lane-tile for the ragged (1, total) path: multiple of 128 (or full extent)."""
    if total > _TN_MAX:
        return _TN_MAX
    if total >= 2 * _LANE and _MIN_STEPS > 1:
        return min(_round_up(pl.cdiv(total, _MIN_STEPS), _LANE), total)
    return total                          # full extent


def _background_flat(rgb_flat, w_flat, bg_flat):
    """Elementwise out = rgb + (1 - w) * bg on flat 1-D buffers (no copies)."""
    total = rgb_flat.shape[0]

    if total % _LANE == 0 and total >= _LANE:
        # Dense, fully sublane+lane packed view: (rows, 128), free bitcast.
        rows = total // _LANE
        shape2d = (rows, _LANE)
        tm = _choose_rows(rows)
        block = (tm, _LANE)
        grid = (pl.cdiv(rows, tm),)
        spec = pl.BlockSpec(block, lambda i: (i, 0))
    else:
        # Ragged fallback: (1, total) lane view, partial final block is masked.
        shape2d = (1, total)
        tn = _choose_lanes(total)
        block = (1, tn)
        grid = (pl.cdiv(total, tn),)
        spec = pl.BlockSpec(block, lambda i: (0, i))

    rgb2 = rgb_flat.reshape(shape2d)      # free (contiguous)
    w2 = w_flat.reshape(shape2d)          # free
    bg2 = bg_flat.reshape(shape2d)        # free

    item = jnp.dtype(rgb_flat.dtype).itemsize
    w_item = jnp.dtype(w_flat.dtype).itemsize
    cost = pl.CostEstimate(
        flops=3 * total,                  # sub + mul + add per element
        transcendentals=0,
        bytes_accessed=3 * item * total + w_item * total,
    )

    out2 = pl.pallas_call(
        _background_kernel,
        out_shape=jax.ShapeDtypeStruct(shape2d, rgb_flat.dtype),
        grid_spec=pltpu.PrefetchScalarGridSpec(
            num_scalar_prefetch=0,
            grid=grid,
            in_specs=[spec, spec, spec],
            out_specs=spec,
        ),
        compiler_params=pltpu.CompilerParams(
            dimension_semantics=("parallel",),
            vmem_limit_bytes=_VMEM_LIMIT_BYTES,
        ),
        cost_estimate=cost,
    )(rgb2, w2, bg2)

    return out2.reshape(total)


def background_forward(rgb, accumulated_weights, background=None):
    """JAX/Pallas equivalent of Background.forward.

    rgb:                  (N, C) array
    accumulated_weights:  (N,)   array
    background:           (N, C) array or None ('background' not in batch)
    """
    if background is None:                # 'background' not in batch -> identity
        return rgb

    n, c = rgb.shape
    rgb_flat = rgb.reshape(n * c)                       # free bitcast (row-major)
    bg_flat = background.reshape(n * c)                 # free bitcast
    # Only real extra HBM op in the wrapper: per-channel replication of w.
    w_flat = jnp.repeat(accumulated_weights, c)         # (N*C,), w[n*C + c] = w[n]

    out_flat = _background_flat(rgb_flat, w_flat, bg_flat)
    return out_flat.reshape(n, c)


if __name__ == "__main__":
    key = jax.random.PRNGKey(0)
    k1, k2, k3 = jax.random.split(key, 3)
    C = 3

    # Case A: N*C divisible by 128 -> dense (rows, 128) path.
    N = 1280
    rgb = jax.random.uniform(k1, (N, C), dtype=jnp.float32)
    acc_w = jax.random.uniform(k2, (N,), dtype=jnp.float32)
    bg = jax.random.uniform(k3, (N, C), dtype=jnp.float32)
    out = jax.block_until_ready(background_forward(rgb, acc_w, bg))
    ref = rgb + (1.0 - acc_w).reshape(-1, 1) * bg
    assert out.shape == rgb.shape and out.dtype == rgb.dtype
    assert jnp.allclose(out, ref, atol=1e-6), "dense path mismatch vs reference"

    # Case B: ragged size (N*C % 128 != 0) -> (1, T) path with partial final block.
    N2 = 1000
    rgb_b = jax.random.uniform(k1, (N2, C), dtype=jnp.float32)
    acc_w_b = jax.random.uniform(k2, (N2,), dtype=jnp.float32)
    bg_b = jax.random.uniform(k3, (N2, C), dtype=jnp.float32)
    out_b = jax.block_until_ready(background_forward(rgb_b, acc_w_b, bg_b))
    ref_b = rgb_b + (1.0 - acc_w_b).reshape(-1, 1) * bg_b
    assert jnp.allclose(out_b, ref_b, atol=1e-6), "ragged path mismatch vs reference"

    # Case C: 'background' not in batch -> identity.
    out_id = jax.block_until_ready(background_forward(rgb, acc_w, None))
    assert jnp.allclose(out_id, rgb), "identity path mismatch"

    print("KERNEL_OK")
</pallas_src>

<mosaic_0001>
module attributes {stable_mosaic.version = 11 : i64} {
  func.func @_background_kernel(%arg0: i32, %arg1: memref<16x128xf32, #tpu.memory_space<vmem>>, %arg2: memref<16x128xf32, #tpu.memory_space<vmem>>, %arg3: memref<16x128xf32, #tpu.memory_space<vmem>>, %arg4: memref<16x128xf32, #tpu.memory_space<vmem>>) attributes {dimension_semantics = [#tpu.dimension_semantics<parallel>], iteration_bounds = array<i64: 2>, scalar_prefetch = 0 : i64, scratch_operands = 0 : i64, tpu.core_type = #tpu.core_type<tc>, window_params = [{transform_indices = @transform_0, window_bounds = array<i64: 16, 128>}, {transform_indices = @transform_1, window_bounds = array<i64: 16, 128>}, {transform_indices = @transform_2, window_bounds = array<i64: 16, 128>}, {transform_indices = @transform_3, window_bounds = array<i64: 16, 128>}]} {
    %c0 = arith.constant 0 : index
    %c0_0 = arith.constant 0 : index
    %0 = vector.load %arg1[%c0, %c0_0] : memref<16x128xf32, #tpu.memory_space<vmem>>, vector<16x128xf32>
    %c0_1 = arith.constant 0 : index
    %c0_2 = arith.constant 0 : index
    %1 = vector.load %arg2[%c0_1, %c0_2] : memref<16x128xf32, #tpu.memory_space<vmem>>, vector<16x128xf32>
    %c0_3 = arith.constant 0 : index
    %c0_4 = arith.constant 0 : index
    %2 = vector.load %arg3[%c0_3, %c0_4] : memref<16x128xf32, #tpu.memory_space<vmem>>, vector<16x128xf32>
    %cst = arith.constant 1.000000e+00 : f32
    %3 = vector.broadcast %cst : f32 to vector<16x128xf32>
    %4 = arith.subf %3, %1 : vector<16x128xf32>
    %5 = arith.mulf %4, %2 : vector<16x128xf32>
    %6 = arith.addf %0, %5 : vector<16x128xf32>
    %c0_5 = arith.constant 0 : index
    %c0_6 = arith.constant 0 : index
    %7 = vector.load %arg4[%c0_5, %c0_6] : memref<16x128xf32, #tpu.memory_space<vmem>>, vector<16x128xf32>
    tpu.vector_store %arg4[%c0_5, %c0_6], %6 {strides = array<i32>} : memref<16x128xf32, #tpu.memory_space<vmem>>, vector<16x128xf32>,
    return
  }
  func.func @transform_0(%arg0: i32) -> (i32, i32) {
    %c0_i32 = arith.constant 0 : i32
    %c0_i32_0 = arith.constant 0 : i32
    return %arg0, %c0_i32 : i32, i32
  }
  func.func @transform_1(%arg0: i32) -> (i32, i32) {
    %c0_i32 = arith.constant 0 : i32
    %c0_i32_0 = arith.constant 0 : i32
    return %arg0, %c0_i32 : i32, i32
  }
  func.func @transform_2(%arg0: i32) -> (i32, i32) {
    %c0_i32 = arith.constant 0 : i32
    %c0_i32_0 = arith.constant 0 : i32
    return %arg0, %c0_i32 : i32, i32
  }
  func.func @transform_3(%arg0: i32) -> (i32, i32) {
    %c0_i32 = arith.constant 0 : i32
    %c0_i32_0 = arith.constant 0 : i32
    return %arg0, %c0_i32 : i32, i32
  }
}

</mosaic_0001>

<bundles_post_ra>
// kernel: tpu_custom_call.1
= control target key start
LH: loop header
LB: loop body
LE: loop exit
PB: predicated region body
PF: predicated region fallthrough
CT: control target
= control target key end

     0   :  { %s945_s0 = inlined_call_operand.hbm [shape: f32[30,128], index: 0, kind: input, shape index: {}]   ;;  %s946_s1 = inlined_call_operand.hbm [shape: f32[30,128], index: 1, kind: input, shape index: {}]   ;;  %s947_s2 = inlined_call_operand.hbm [shape: f32[30,128], index: 2, kind: input, shape index: {}]   ;;  %s948_s3 = inlined_call_operand.hbm [shape: f32[30,128], index: 3, kind: output, shape index: {}]  }
   0x1   :  { %955 = sst [smem:[#allocation12_spill]] %s945_s0 }
   0x2   :  { %8 = vsyncpa [#allocation3], 0 }
   0x3   :  { %10 = vsyncpa [#allocation3 + $0x1], 0 }
   0x4   :  { %11 = vsyncpa [#allocation6], 0 }
   0x5   :  { %13 = vsyncpa [#allocation6 + $0x1], 0 }
   0x6   :  { %14 = vsyncpa [#allocation4], 0 }
   0x7   :  { %16 = vsyncpa [#allocation4 + $0x1], 0  ;;  %s690_s12 = smov 0   ;;  %s692_s13 = smov 0  }
   0x8   :  { %s694_s14 = smov 0   ;;  %s696_s15 = smov 0  }
   0x9 LB: > { %s711_s16 = sadd.s32 4294967295, %s660_s15   ;;  %s414_s17 = sadd.s32 4294967294, %s660_s15   ;;  %s660_s15 = sphi %s696_s15, %s974_s15   ;;  %s656_s14 = sphi %s694_s14, %s973_s14   ;;  %s652_s13 = sphi %s692_s13, %s972_s13   ;;  %s648_s12 = sphi %s690_s12, %s971_s12  }
   0xa   : > { %s715_s18 = sadd.s32 1, %s660_s15   ;;  %s29_s19 = sadd.s32 1, %s656_s14 }
   0xb   : > { %s26_s20 = ssub.s32 %s660_s15, %s715_s18  ;;  %p36_p0 = scmp.ne.s32.totalorder %s656_s14, %s652_s13 }
   0xc   : > { %p27_p1 = scmp.eq.s32.totalorder %s26_s20, 0  ;;  %p37_p2 = scmp.eq.s32.totalorder %s660_s15, 0 }
   0xd   : > { %p42_p3 = scmp.ne.s32.totalorder %s652_s13, %s648_s12  ;;  %p43_p4 = scmp.eq.s32.totalorder %s711_s16, 0 }
   0xe   : > { %s727_s21 = scalar_select %p27_p1, %s656_s14, %s29_s19  }
   0xf   : > { %p38_p5 = por %p37_p2, %p36_p0  ;;  %p729_p6 = por %p43_p4, %p42_p3 }
  0x10   : > { %p118_p7 = scmp.eq.s32.totalorder %s711_s16, 1  ;;  %p124_p8 = scmp.eq.s32.totalorder %s414_s17, 1 }
  0x11   : > { %s956_s22 = scalar_select %p729_p6, 1, 0 }
  0x12   : > { %p462_p10 = scmp.lt.s32.totalorder %s660_s15, 2  ;;  %p736_p11 = por %p118_p7, %p36_p0 }
  0x13   : > { %p740_p12 = por %p124_p8, %p42_p3  ;;  %s144_s25 = sand.u32 1, %s656_s14  }
  0x14   : > { %s957_s23 = scalar_select %p736_p11, 1, 0 }
  0x15   : > { %s958_s24 = scalar_select %p740_p12, 1, 0 }
  0x16   : > { %s746_s26 = sshll.u32 %s660_s15, 8  ;;  %s750_s27 = sshll.u32 %s144_s25, 4 }
  0x17   : > { %p752_p13 = pnand %p462_p10, %p38_p5  ;;  %s165_s29 = sand.u32 1, %s660_s15  }
  0x18   : > { %s761_s5 = scalar_lea.hbm %s946_s1, %s746_s26  ;;  %s169_s6 = scalar_lea.vmem [#allocation5], %s750_s27 }
  0x19   : > { %s176_s7 = sshll.u32 %s169_s6, 4  ;;  %s767_s8 = scalar_lea.sflag [#allocation6], %s165_s29  ;;  %s764_s7 = int_to_ptr.vmem [resolvable:$true] %s176_s7 }
  0x1a   : > { %s500_s9 = scalar_lea.hbm %s761_s5, 256  ;;  %p773_p2 = pneg %p752_p13 }
  0x1b   : > { %p501_p1 = scmp.ne.s32.totalorder %s761_s5, %s500_s9  ;;  %s505_s19 = scalar_lea.hbm %s946_s1, 512 }
  0x1c   : > { %p506_p5 = scmp.lt.u32.totalorder %s761_s5, %s946_s1  ;;  %p507_p7 = scmp.lt.u32.totalorder %s505_s19, %s500_s9 }
  0x1d   : > { %p503_p3 = pnand %p773_p2, %p501_p1  ;;  %p509_p10 = scmp.lt.u32.totalorder %s500_s9, %s761_s5 }
  0x1e   : > { %p508_p8 = por %p507_p7, %p506_p5 }
  0x1f   : > { %p504_p4 = pneg %p503_p3 }
  0x20   : > { %p510_p9 = por %p509_p10, %p508_p8 }
  0x22   : > { %p511_p0 = pnand %p510_p9, %p504_p4 }
  0x24   : > { %514 = shalt.err (!%p511_p0)
}
  0x25   : > { %s515_s29 = scalar_lea.vmem %s764_s7, 256  ;;  %s662_s4 = smov [#allocation5]  }
  0x26   : > { %p516_p1 = scmp.ne.s32.totalorder %s764_s7, %s515_s29  ;;  %s520_s6 = sshll.u32 %s662_s4, 4  ;;  %s521_s6 = int_to_ptr.vmem [resolvable:$false] %s520_s6 }
  0x27   : > { %s522_s11 = scalar_lea.vmem %s521_s6, 512  ;;  %p523_p11 = scmp.lt.s32.totalorder %s764_s7, %s521_s6 }
  0x28   : > { %p518_p3 = pnand %p516_p1, %p773_p2  ;;  %p524_p6 = scmp.lt.s32.totalorder %s522_s11, %s515_s29 }
  0x2a   : > { %p519_p12 = pneg %p518_p3  ;;  %p525_p5 = por %p524_p6, %p523_p11 }
  0x2c   : > { %p526_p7 = pnand %p525_p5, %p519_p12 }
  0x2e   : > { %529 = shalt.err (!%p526_p7)
}
  0x2f   : > { %s951_s9 = smov 128   ;;  %s953_s17 = smov 8  }
  0x30   : > { %454 = dma.hbm_to_vmem [thread:$0]  (!%p752_p13), %s761_s5, 256, %s764_s7, %s767_s8, %s951_s9, %s951_s9, %s953_s17  }
  0x31   : > { %p205_p6 = scmp.lt.s32.totalorder %s660_s15, 3  ;;  %s961_s0 = sld [smem:[#allocation12_spill]] }
  0x32   : > { %p962_p9 = scmp.ge.s32.totalorder %s660_s15, 1  ;;  %s148_s4 = scalar_lea.vmem [#allocation2], %s750_s27 }
  0x33   : > { %s155_s6 = sshll.u32 %s148_s4, 4  ;;  %s818_s5 = scalar_lea.sflag [#allocation3], %s144_s25  ;;  %s814_s6 = int_to_ptr.vmem [resolvable:$true] %s155_s6 }
  0x34   : > { %p809_p11 = pnand %p962_p9, %p205_p6 }
  0x36   : > { %s963_s29 = scalar_select %p809_p11, 1, 0 }
  0x37   : > { %s805_s30 = scalar_lea.hbm %s961_s0, %s746_s26  ;;  %s535_s20 = scalar_lea.hbm %s961_s0, 512 }
  0x38   : > { %s530_s7 = scalar_lea.hbm %s805_s30, 256  ;;  %p536_p8 = scmp.lt.u32.totalorder %s805_s30, %s961_s0 }
  0x39   : > { %p531_p12 = scmp.ne.s32.totalorder %s805_s30, %s530_s7  ;;  %p537_p10 = scmp.lt.u32.totalorder %s535_s20, %s530_s7 }
  0x3a   : > { %p539_p3 = scmp.lt.u32.totalorder %s530_s7, %s805_s30 }
  0x3b   : > { %p533_p0 = pnand %p531_p12, %p773_p2  ;;  %p538_p1 = por %p537_p10, %p536_p8 }
  0x3d   : > { %p534_p4 = pneg %p533_p0  ;;  %p540_p5 = por %p539_p3, %p538_p1 }
  0x3f   : > { %p541_p7 = pnand %p540_p5, %p534_p4 }
  0x41   : > { %544 = shalt.err (!%p541_p7)
}
  0x42   : > { %s545_s25 = scalar_lea.vmem %s814_s6, 256  ;;  %s665_s4 = smov [#allocation2]  }
  0x43   : > { %p546_p6 = scmp.ne.s32.totalorder %s814_s6, %s545_s25  ;;  %s550_s11 = sshll.u32 %s665_s4, 4  ;;  %s551_s11 = int_to_ptr.vmem [resolvable:$false] %s550_s11 }
  0x44   : > { %s552_s9 = scalar_lea.vmem %s551_s11, 512  ;;  %p553_p0 = scmp.lt.s32.totalorder %s814_s6, %s551_s11 }
  0x45   : > { %p548_p9 = pnand %p546_p6, %p773_p2  ;;  %p554_p11 = scmp.lt.s32.totalorder %s552_s9, %s545_s25 }
  0x47   : > { %p549_p12 = pneg %p548_p9  ;;  %p555_p8 = por %p554_p11, %p553_p0 }
  0x49   : > { %p556_p10 = pnand %p555_p8, %p549_p12 }
  0x4b   : > { %559 = shalt.err (!%p556_p10)
}
  0x4c   : > { %s964_s17 = smov 8   ;;  %s965_s7 = smov 128  }
  0x4d   : > { %451 = dma.hbm_to_vmem [thread:$0]  (!%p752_p13), %s805_s30, 256, %s814_s6, %s818_s5, %s965_s7, %s965_s7, %s964_s17  }
  0x4e   : > { %s849_s4 = scalar_lea.hbm %s947_s2, %s746_s26  ;;  %s190_s25 = scalar_lea.vmem [#allocation7], %s750_s27 }
  0x4f   : > { %s197_s11 = sshll.u32 %s190_s25, 4  ;;  %s560_s9 = scalar_lea.hbm %s849_s4, 256  ;;  %s852_s11 = int_to_ptr.vmem [resolvable:$true] %s197_s11 }
  0x50   : > { %p561_p11 = scmp.ne.s32.totalorder %s849_s4, %s560_s9  ;;  %s565_s6 = scalar_lea.hbm %s947_s2, 512 }
  0x51   : > { %p566_p3 = scmp.lt.u32.totalorder %s849_s4, %s947_s2  ;;  %p567_p5 = scmp.lt.u32.totalorder %s565_s6, %s560_s9 }
  0x52   : > { %p563_p4 = pnand %p561_p11, %p773_p2  ;;  %p569_p6 = scmp.lt.u32.totalorder %s560_s9, %s849_s4 }
  0x53   : > { %p568_p7 = por %p567_p5, %p566_p3 }
  0x54   : > { %p564_p1 = pneg %p563_p4 }
  0x55   : > { %p570_p9 = por %p569_p6, %p568_p7 }
  0x57   : > { %p571_p12 = pnand %p570_p9, %p564_p1 }
  0x59   : > { %574 = shalt.err (!%p571_p12)
}
  0x5a   : > { %s575_s27 = scalar_lea.vmem %s852_s11, 256  ;;  %s666_s0 = smov [#allocation7]  }
  0x5b   : > { %p576_p0 = scmp.ne.s32.totalorder %s852_s11, %s575_s27  ;;  %s580_s19 = sshll.u32 %s666_s0, 4  ;;  %s581_s19 = int_to_ptr.vmem [resolvable:$false] %s580_s19 }
  0x5c   : > { %s582_s20 = scalar_lea.vmem %s581_s19, 512  ;;  %p583_p11 = scmp.lt.s32.totalorder %s852_s11, %s581_s19 }
  0x5d   : > { %p578_p8 = pnand %p576_p0, %p773_p2  ;;  %p584_p4 = scmp.lt.s32.totalorder %s582_s20, %s575_s27 }
  0x5f   : > { %p579_p10 = pneg %p578_p8  ;;  %p585_p3 = por %p584_p4, %p583_p11 }
  0x61   : > { %p586_p5 = pnand %p585_p3, %p579_p10 }
  0x63   : > { %589 = shalt.err (!%p586_p5)
}
  0x64   : > { %457 = dma.hbm_to_vmem [thread:$0]  (!%p752_p13), %s849_s4, 256, %s852_s11, %s767_s8, %s965_s7, %s965_s7, %s964_s17  }
  0x65   : > { %p966_p2 = scmp.ne.s32.totalorder %s963_s29, 0 }
  0x66   : > { %s882_s10 = sand.u32 (!%p966_p2), 1, %s652_s13   ;;  %p967_p1 = scmp.ne.s32.totalorder (!%p966_p2), %s956_s22, 0 }
  0x67   : > { %209 = sbr.rel (%p966_p2) target bundleno = 141 (0x8d), region = 32  ;;  %s427_s25 = sshll.u32 (!%p966_p2), %s882_s10, 4 }
  0x68   : > { %s212_s9 = scalar_lea.sflag (!%p966_p2), [#allocation3], %s882_s10  ;;  %s215_s30 = scalar_lea.vmem (!%p966_p2), [#allocation2], %s427_s25 }
  0x6e   : > { %635 = dma.done.wait (%p967_p1), %s212_s9, 256  }
  0x6f   : > { %637 = vsyncadd (%p967_p1), %s212_s9, 4294967040  ;;  %s220_s28 = sand.u32 1, %s711_s16   ;;  %s224_s29 = scalar_lea.vmem [#allocation5], %s427_s25 }
  0x70   : > { %s221_s8 = scalar_lea.sflag [#allocation6], %s220_s28 }
  0x71   : > { %639 = dma.done.wait (%p967_p1), %s221_s8, 512  }
  0x72   : > { %641 = vsyncadd (%p967_p1), %s221_s8, 4294966784  ;;  %v272_v0 = vld [vmem:[%s224_s29] sm:$0xff]  ;;  %s233_s17 = scalar_lea.vmem [#allocation7], %s427_s25  ;;  %v273_v3 = vld [vmem:[%s224_s29 + $0x8] sm:$0xff]  ;;  %s265_s7 = scalar_lea.vmem [#allocation8], %s427_s25 }
  0x73   : > { %v274_v1 = vld [vmem:[%s233_s17] sm:$0xff]  ;;  %v276_v2 = vsub.f32 1.0, %v272_v0  ;;  %v275_v4 = vld [vmem:[%s233_s17 + $0x8] sm:$0xff]  ;;  %s298_s4 = sshll.u32 %s265_s7, 4  ;;  %v277_v6 = vsub.f32 1.0, %v273_v3  ;;  %s439_s11 = sshll.u32 %s711_s16, 8  ;;  %s896_s4 = int_to_ptr.vmem [resolvable:$true] %s298_s4 }
  0x74   : > { %v270_v5 = vld [vmem:[%s215_s30] sm:$0xff]  ;;  %v271_v8 = vld [vmem:[%s215_s30 + $0x8] sm:$0xff]  ;;  %s901_s5 = scalar_lea.hbm %s948_s3, %s439_s11  ;;  %s285_s26 = scalar_lea.sflag [#allocation4], %s882_s10 }
  0x75   : > { %v278_v7 = vmul.f32 %v276_v2, %v274_v1  ;;  %v279_v9 = vmul.f32 %v277_v6, %v275_v4  ;;  %s590_s27 = scalar_lea.vmem %s896_s4, 256  ;;  %p968_p7 = scmp.ne.s32.totalorder %s957_s23, 0 }
  0x76   : > { %p591_p13 = scmp.ne.s32.totalorder %s896_s4, %s590_s27  ;;  %s667_s16 = smov [#allocation8]  }
  0x77   : > { %v280_v10 = vadd.f32 %v278_v7, %v270_v5  ;;  %v281_v11 = vadd.f32 %v279_v9, %v271_v8  ;;  %s594_s0 = sshll.u32 %s667_s16, 4  ;;  %s595_s0 = int_to_ptr.vmem [resolvable:$false] %s594_s0 }
  0x78   : > { %p592_p6 = pnand %p591_p13, %p968_p7  ;;  %s596_s19 = scalar_lea.vmem %s595_s0, 512 }
  0x79   : > { %282 = vst [vmem:[%s265_s7] sm:$0xff] %v280_v10  ;;  %283 = vst [vmem:[%s265_s7 + $0x8] sm:$0xff] %v281_v11  ;;  %p597_p12 = scmp.lt.s32.totalorder %s896_s4, %s595_s0  ;;  %p598_p0 = scmp.lt.s32.totalorder %s596_s19, %s590_s27 }
  0x7a   : > { %p593_p9 = pneg %p592_p6 }
  0x7b   : > { %p599_p8 = por %p598_p0, %p597_p12 }
  0x7d   : > { %p600_p10 = pnand %p599_p8, %p593_p9 }
  0x7f   : > { %603 = shalt.err (!%p600_p10)
}
  0x80   : > { %s604_s20 = scalar_lea.hbm %s901_s5, 256  ;;  %s608_s30 = scalar_lea.hbm %s948_s3, 512 }
  0x81   : > { %p605_p11 = scmp.ne.s32.totalorder %s901_s5, %s604_s20  ;;  %p609_p5 = scmp.lt.u32.totalorder %s901_s5, %s948_s3 }
  0x82   : > { %p610_p2 = scmp.lt.u32.totalorder %s608_s30, %s604_s20  ;;  %p612_p13 = scmp.lt.u32.totalorder %s604_s20, %s901_s5 }
  0x83   : > { %p606_p4 = pnand %p605_p11, %p968_p7 }
  0x84   : > { %p611_p1 = por %p610_p2, %p609_p5 }
  0x85   : > { %p607_p3 = pneg %p606_p4 }
  0x86   : > { %p613_p6 = por %p612_p13, %p611_p1 }
  0x88   : > { %p614_p9 = pnand %p613_p6, %p607_p3 }
  0x8a   : > { %617 = shalt.err (!%p614_p9)
}
  0x8b   : > { %s668_s29 = smov 128   ;;  %s669_s17 = smov 8  }
  0x8c   : > { %446 = dma.vmem_to_hbm [thread:$0]  (%p968_p7), %s896_s4, 256, %s901_s5, %s285_s26, %s668_s29, %s668_s29, %s669_s17  }
  0x8d PF: > { %s313_s7 = sand.u32 1, %s648_s12   ;;  %p969_p12 = scmp.ne.s32.totalorder %s958_s24, 0 }
  0x8e   : > { %p970_p0 = scmp.ge.s32.totalorder %s660_s15, 2  ;;  %s314_s11 = scalar_lea.sflag [#allocation4], %s313_s7 }
  0x90   : > { %p459_p8 = pnand %p970_p0, %p969_p12 }
  0x92   : > { %643 = dma.done.wait (!%p459_p8), %s314_s11, 256  }
  0x93   : > { %645 = vsyncadd (!%p459_p8), %s314_s11, 4294967040  ;;  %p19_p10 = scmp.ge.s32.totalorder %s715_s18, 4   ;;  %s971_s12 = smov %s652_s13 }
  0x94   : > { %s972_s13 = smov %s656_s14  ;;  %s973_s14 = smov %s727_s21 }
  0x95   : > { %s974_s15 = smov %s715_s18  ;;  %21 = sbr.rel (!%p19_p10) target bundleno = 9 (0x9), region = 101 }
  0x9c   :  { %319 = vsyncpa [#allocation3], 1 }
  0x9d   :  { %321 = vsyncpa [#allocation3 + $0x1], 1 }
  0x9e   :  { %322 = vsyncpa [#allocation6], 1 }
  0x9f   :  { %324 = vsyncpa [#allocation6 + $0x1], 1 }
  0xa0   :  { %325 = vsyncpa [#allocation4], 1 }
  0xa1   :  { %327 = vsyncpa [#allocation4 + $0x1], 1 }

</bundles_post_ra>
